<compile_context>
chip_gen: v7x
topology: tpu7x:2x2x1
jax: 0.10.0
libtpu: 0.0.40
codegen_flags: <defaults>
</compile_context>

<pallas_src>
import jax
import jax.numpy as jnp
from jax.experimental import pallas as pl
from jax.experimental.pallas import tpu as pltpu


def _round_up(x, m):
    return ((x + m - 1) // m) * m


def _ff_fused_kernel(xr_ref, xf_ref, wr_ref, wf_ref, b_ref, o_ref):
    """Single fused GEMM for one (batch tile, output tile).

    xr_ref: (TB, D_r)   qremb tile
    xf_ref: (TB, D_f)   qfemb tile
    wr_ref: (D_r, TN)   fused-weight rows for qremb, output-tile columns
    wf_ref: (D_f, TN)   fused-weight rows for qfemb, output-tile columns
    b_ref:  (1,  TN)    fused bias tile
    o_ref:  (TB, TN)    output tile (lane-dense, padded)
    """
    acc = jnp.dot(xr_ref[...], wr_ref[...], preferred_element_type=jnp.float32)
    acc = acc + jnp.dot(xf_ref[...], wf_ref[...],
                        preferred_element_type=jnp.float32)
    acc = acc + b_ref[...].astype(jnp.float32)
    o_ref[...] = acc.astype(o_ref.dtype)


def fuse_ff_modifier_params(w1, b1, w2, b2, d_r, *, lane_pad=128,
                            compute_dtype=None):
    """One-time (per weight update) precompute of the fused parameters.

    w1: [D_in, D_in]  fc_1 weight, pre-transposed (x @ w1 == torch x @ W1.T)
    b1: [D_in]        fc_1 bias
    w2: [D_in, D_out] fc_2 weight, pre-transposed
    b2: [D_out]       fc_2 bias
    d_r: width of qremb (first chunk of the concatenated input)

    Returns (w_r, w_f, b_f_2d, d_out, d_r) where the fused weight W1 @ W2 is
    split row-wise at d_r and its output dim is padded to a multiple of
    `lane_pad` for lane-dense stores.
    """
    d_in, d_out = w2.shape
    assert w1.shape == (d_in, d_in)
    assert 0 < d_r < d_in

    # Algebraic fusion in f32 (no nonlinearity between the two linears):
    #   (x @ w1 + b1) @ w2 + b2 == x @ (w1 @ w2) + (b1 @ w2 + b2)
    w_fused = jnp.dot(w1.astype(jnp.float32), w2.astype(jnp.float32))
    b_fused = jnp.dot(b1.astype(jnp.float32), w2.astype(jnp.float32)) \
        + b2.astype(jnp.float32)

    dtype = compute_dtype or w1.dtype
    w_fused = w_fused.astype(dtype)
    b_fused = b_fused.astype(dtype)

    # Pad output dim to a lane multiple -> unmasked vst in the kernel.
    d_out_pad = _round_up(d_out, lane_pad)
    if d_out_pad != d_out:
        w_fused = jnp.pad(w_fused, ((0, 0), (0, d_out_pad - d_out)))
        b_fused = jnp.pad(b_fused, (0, d_out_pad - d_out))

    # Row-split so the kernel never needs the concatenated activations.
    w_r = w_fused[:d_r, :]
    w_f = w_fused[d_r:, :]
    b_f_2d = b_fused.reshape(1, d_out_pad)
    return w_r, w_f, b_f_2d, d_out, d_r


def _pick_tile_b(B, tile_b):
    if tile_b is not None:
        if B % tile_b != 0:
            raise ValueError(f"tile_b={tile_b} must divide B={B}")
        return tile_b
    if B <= 512:
        return B
    for t in (512, 256, 128, 64, 32, 16, 8):
        if B % t == 0:
            return t
    return B  # fallback: single step (no clean multiple-of-8 divisor)


def _pick_tile_n(d_out_pad, tile_n):
    if tile_n is not None:
        if d_out_pad % tile_n != 0 or tile_n % 128 != 0:
            raise ValueError(
                f"tile_n={tile_n} must be a multiple of 128 dividing "
                f"{d_out_pad}")
        return tile_n
    if d_out_pad <= 512:
        return d_out_pad
    for t in (512, 384, 256, 128):
        if d_out_pad % t == 0:
            return t
    return d_out_pad


def ff_modifier_head(qremb, qfemb, fused_params, *, tile_b=None, tile_n=None):
    """FFModifierHead.forward (dropout_prob=0.0) on fused parameters.

    qremb: [B, D_r], qfemb: [B, D_f]  ->  [B, D_out]
    fused_params: output of fuse_ff_modifier_params.
    """
    w_r, w_f, b_f, d_out, d_r = fused_params
    B, dr = qremb.shape
    _, df = qfemb.shape
    assert dr == d_r and dr == w_r.shape[0] and df == w_f.shape[0]
    d_out_pad = w_r.shape[1]
    dtype = w_r.dtype

    # dtype promotion of activations (matches the PyTorch `.to(weight.dtype)`).
    if qremb.dtype != dtype:
        qremb = qremb.astype(dtype)
    if qfemb.dtype != dtype:
        qfemb = qfemb.astype(dtype)

    tb = _pick_tile_b(B, tile_b)
    tn = _pick_tile_n(d_out_pad, tile_n)
    # N axis innermost: activation blocks keep the same block index across it
    # and are not re-fetched; weight column-tiles stream through VMEM.
    grid = (B // tb, d_out_pad // tn)

    itemsize = jnp.dtype(dtype).itemsize
    cost = pl.CostEstimate(
        flops=2 * B * (dr + df) * d_out_pad,
        transcendentals=0,
        bytes_accessed=(B * (dr + df)                    # activations in
                        + (dr + df) * d_out_pad          # fused weight
                        + d_out_pad                      # fused bias
                        + B * d_out_pad) * itemsize,     # output
    )

    out = pl.pallas_call(
        _ff_fused_kernel,
        out_shape=jax.ShapeDtypeStruct((B, d_out_pad), dtype),
        grid_spec=pl.GridSpec(
            grid=grid,
            in_specs=[
                pl.BlockSpec((tb, dr), lambda i, j: (i, 0)),   # qremb tile
                pl.BlockSpec((tb, df), lambda i, j: (i, 0)),   # qfemb tile
                pl.BlockSpec((dr, tn), lambda i, j: (0, j)),   # W_fused[:dr]
                pl.BlockSpec((df, tn), lambda i, j: (0, j)),   # W_fused[dr:]
                pl.BlockSpec((1, tn), lambda i, j: (0, j)),    # bias
            ],
            out_specs=pl.BlockSpec((tb, tn), lambda i, j: (i, j)),
        ),
        compiler_params=pltpu.CompilerParams(
            dimension_semantics=("parallel", "parallel")),
        cost_estimate=cost,
    )(qremb, qfemb, w_r, w_f, b_f)

    # Strip the lane padding (cheap XLA slice).
    if d_out_pad != d_out:
        out = out[:, :d_out]
    return out


def init_params(key, input_size, output_size, dtype=jnp.float32):
    """Deterministic nn.Linear-style init (uniform +-1/sqrt(fan_in)).

    Weights are stored already transposed: [D_in, D_out] so that x @ W
    matches PyTorch's x @ W.T.
    """
    k1, k2, k3, k4 = jax.random.split(key, 4)
    bound = 1.0 / (input_size ** 0.5)
    w1 = jax.random.uniform(k1, (input_size, input_size), dtype, -bound, bound)
    b1 = jax.random.uniform(k2, (input_size,), dtype, -bound, bound)
    w2 = jax.random.uniform(k3, (input_size, output_size), dtype, -bound, bound)
    b2 = jax.random.uniform(k4, (output_size,), dtype, -bound, bound)
    return w1, b1, w2, b2


if __name__ == "__main__":
    key = jax.random.PRNGKey(0)
    kq, kf, kp = jax.random.split(key, 3)

    # Small shapes consistent with the module: batch=8, qremb=16, qfemb=16
    # -> input_size=32, output_size=32 (exercises the 128-lane padding path).
    B, D_R, D_F = 8, 16, 16
    input_size = D_R + D_F
    output_size = 32

    qremb = jax.random.normal(kq, (B, D_R), jnp.float32)
    qfemb = jax.random.normal(kf, (B, D_F), jnp.float32)
    w1, b1, w2, b2 = init_params(kp, input_size, output_size)

    # One-time fusion + padding of the parameters (outside the hot path).
    fused = fuse_ff_modifier_params(w1, b1, w2, b2, d_r=D_R)

    out = ff_modifier_head(qremb, qfemb, fused)
    out = jax.block_until_ready(out)

    # Pure-JAX reference of the original (two-step) math.
    emb = jnp.concatenate((qremb, qfemb), axis=-1)
    ref = (emb @ w1 + b1) @ w2 + b2
    assert out.shape == (B, output_size)
    assert jnp.allclose(out, ref, atol=1e-4, rtol=1e-4), "mismatch vs reference"

    print("KERNEL_OK")
</pallas_src>

<mosaic_0001>
module attributes {stable_mosaic.version = 11 : i64} {
  func.func @_ff_fused_kernel(%arg0: i32, %arg1: i32, %arg2: memref<8x16xf32, #tpu.memory_space<vmem>>, %arg3: memref<8x16xf32, #tpu.memory_space<vmem>>, %arg4: memref<16x128xf32, #tpu.memory_space<vmem>>, %arg5: memref<16x128xf32, #tpu.memory_space<vmem>>, %arg6: memref<1x128xf32, #tpu.memory_space<vmem>>, %arg7: memref<8x128xf32, #tpu.memory_space<vmem>>) attributes {dimension_semantics = [#tpu.dimension_semantics<parallel>, #tpu.dimension_semantics<parallel>], iteration_bounds = array<i64: 1, 1>, scalar_prefetch = 0 : i64, scratch_operands = 0 : i64, tpu.core_type = #tpu.core_type<tc>, window_params = [{transform_indices = @transform_0, window_bounds = array<i64: 8, 16>}, {transform_indices = @transform_1, window_bounds = array<i64: 8, 16>}, {transform_indices = @transform_2, window_bounds = array<i64: 16, 128>}, {transform_indices = @transform_3, window_bounds = array<i64: 16, 128>}, {transform_indices = @transform_4, window_bounds = array<i64: 1, 128>}, {transform_indices = @transform_5, window_bounds = array<i64: 8, 128>}]} {
    %c0 = arith.constant 0 : index
    %c0_0 = arith.constant 0 : index
    %0 = vector.load %arg2[%c0, %c0_0] : memref<8x16xf32, #tpu.memory_space<vmem>>, vector<8x16xf32>
    %c0_1 = arith.constant 0 : index
    %c0_2 = arith.constant 0 : index
    %1 = vector.load %arg4[%c0_1, %c0_2] : memref<16x128xf32, #tpu.memory_space<vmem>>, vector<16x128xf32>
    %cst = arith.constant dense<0.000000e+00> : vector<8x128xf32>
    %2 = tpu.matmul %0, %1, %cst {dimension_numbers = #tpu.dot_dimension_numbers<[1], [0], [0], [1], [0, 0, 1, 1], [], []>} : vector<8x16xf32>, vector<16x128xf32>, vector<8x128xf32> -> vector<8x128xf32>
    %c0_3 = arith.constant 0 : index
    %c0_4 = arith.constant 0 : index
    %3 = vector.load %arg3[%c0_3, %c0_4] : memref<8x16xf32, #tpu.memory_space<vmem>>, vector<8x16xf32>
    %c0_5 = arith.constant 0 : index
    %c0_6 = arith.constant 0 : index
    %4 = vector.load %arg5[%c0_5, %c0_6] : memref<16x128xf32, #tpu.memory_space<vmem>>, vector<16x128xf32>
    %cst_7 = arith.constant dense<0.000000e+00> : vector<8x128xf32>
    %5 = tpu.matmul %3, %4, %cst_7 {dimension_numbers = #tpu.dot_dimension_numbers<[1], [0], [0], [1], [0, 0, 1, 1], [], []>} : vector<8x16xf32>, vector<16x128xf32>, vector<8x128xf32> -> vector<8x128xf32>
    %6 = arith.addf %2, %5 : vector<8x128xf32>
    %c0_8 = arith.constant 0 : index
    %c0_9 = arith.constant 0 : index
    %7 = vector.load %arg6[%c0_8, %c0_9] : memref<1x128xf32, #tpu.memory_space<vmem>>, vector<1x128xf32>
    %8 = vector.broadcast %7 : vector<1x128xf32> to vector<8x128xf32>
    %9 = arith.addf %6, %8 : vector<8x128xf32>
    %c0_10 = arith.constant 0 : index
    %c0_11 = arith.constant 0 : index
    %10 = vector.load %arg7[%c0_10, %c0_11] : memref<8x128xf32, #tpu.memory_space<vmem>>, vector<8x128xf32>
    tpu.vector_store %arg7[%c0_10, %c0_11], %9 {strides = array<i32>} : memref<8x128xf32, #tpu.memory_space<vmem>>, vector<8x128xf32>,
    return
  }
  func.func @transform_0(%arg0: i32, %arg1: i32) -> (i32, i32) {
    %c0_i32 = arith.constant 0 : i32
    %c0_i32_0 = arith.constant 0 : i32
    return %arg0, %c0_i32 : i32, i32
  }
  func.func @transform_1(%arg0: i32, %arg1: i32) -> (i32, i32) {
    %c0_i32 = arith.constant 0 : i32
    %c0_i32_0 = arith.constant 0 : i32
    return %arg0, %c0_i32 : i32, i32
  }
  func.func @transform_2(%arg0: i32, %arg1: i32) -> (i32, i32) {
    %c0_i32 = arith.constant 0 : i32
    %c0_i32_0 = arith.constant 0 : i32
    return %c0_i32, %arg1 : i32, i32
  }
  func.func @transform_3(%arg0: i32, %arg1: i32) -> (i32, i32) {
    %c0_i32 = arith.constant 0 : i32
    %c0_i32_0 = arith.constant 0 : i32
    return %c0_i32, %arg1 : i32, i32
  }
  func.func @transform_4(%arg0: i32, %arg1: i32) -> (i32, i32) {
    %c0_i32 = arith.constant 0 : i32
    %c0_i32_0 = arith.constant 0 : i32
    return %c0_i32, %arg1 : i32, i32
  }
  func.func @transform_5(%arg0: i32, %arg1: i32) -> (i32, i32) {
    %c0_i32 = arith.constant 0 : i32
    return %arg0, %arg1 : i32, i32
  }
}

</mosaic_0001>

<bundles_post_ra>
// kernel: tpu_custom_call.1
= control target key start
LH: loop header
LB: loop body
LE: loop exit
PB: predicated region body
PF: predicated region fallthrough
CT: control target
= control target key end

     0   :  { %10 = vsyncpa [#allocation3], 0  ;;  %s511_s0 = inlined_call_operand.hbm [shape: f32[8,16], index: 0, kind: input, shape index: {}]   ;;  %s512_s1 = inlined_call_operand.hbm [shape: f32[8,16], index: 1, kind: input, shape index: {}]   ;;  %s513_s2 = inlined_call_operand.hbm [shape: f32[16,128], index: 2, kind: input, shape index: {}]   ;;  %s514_s3 = inlined_call_operand.hbm [shape: f32[16,128], index: 3, kind: input, shape index: {}]   ;;  %s515_s4 = inlined_call_operand.vmem [shape: f32[1,128], index: 4, kind: input, shape index: {}]   ;;  %s516_s5 = inlined_call_operand.hbm [shape: f32[8,128], index: 5, kind: output, shape index: {}]  }
   0x1   :  { %11 = vsyncpa [#allocation6], 0 }
   0x2   :  { %12 = vsyncpa [#allocation9], 0 }
   0x3   :  { %13 = vsyncpa [#allocation4], 0  ;;  %s408_s18 = smov [#allocation5]   ;;  %s409_s20 = smov [#allocation2]  }
   0x4   :  { %s30_s19 = sshll.u32 %s408_s18, 4  ;;  %s20_s21 = sshll.u32 %s409_s20, 4  ;;  %s31_s19 = int_to_ptr.vmem [resolvable:$true] %s30_s19  ;;  %s21_s21 = int_to_ptr.vmem [resolvable:$true] %s20_s21 }
   0x5   :  { %s290_s24 = scalar_lea.hbm %s512_s1, 128 }
   0x6   :  { %p291_p0 = scmp.ne.s32.totalorder %s512_s1, %s290_s24  ;;  %p294_p1 = scmp.lt.u32.totalorder %s290_s24, %s512_s1 }
   0x8   :  { %p296_p2 = pnand %p294_p1, %p291_p0 }
   0xa   :  { %299 = shalt.err (!%p296_p2)
}
   0xb   :  { %s300_s29 = scalar_lea.vmem %s31_s19, 128  ;;  %p305_p4 = scmp.lt.s32.totalorder %s31_s19, %s31_s19 }
   0xc   :  { %p301_p3 = scmp.ne.s32.totalorder %s31_s19, %s300_s29  ;;  %p306_p5 = scmp.lt.s32.totalorder %s300_s29, %s300_s29 }
   0xe   :  { %p307_p6 = por %p306_p5, %p305_p4 }
  0x10   :  { %p308_p7 = pnand %p307_p6, %p301_p3 }
  0x12   :  { %311 = shalt.err (!%p308_p7)
}
  0x13   :  { %33 = dma.hbm_to_vmem [thread:$0]  %s512_s1, 128, %s31_s19, [#allocation6]  }
  0x14   :  { %s312_s9 = scalar_lea.hbm %s511_s0, 128 }
  0x15   :  { %p313_p8 = scmp.ne.s32.totalorder %s511_s0, %s312_s9  ;;  %p316_p9 = scmp.lt.u32.totalorder %s312_s9, %s511_s0 }
  0x17   :  { %p318_p10 = pnand %p316_p9, %p313_p8 }
  0x19   :  { %321 = shalt.err (!%p318_p10)
}
  0x1a   :  { %s322_s14 = scalar_lea.vmem %s21_s21, 128  ;;  %p327_p12 = scmp.lt.s32.totalorder %s21_s21, %s21_s21 }
  0x1b   :  { %p323_p11 = scmp.ne.s32.totalorder %s21_s21, %s322_s14  ;;  %p328_p13 = scmp.lt.s32.totalorder %s322_s14, %s322_s14 }
  0x1d   :  { %p329_p0 = por %p328_p13, %p327_p12 }
  0x1f   :  { %p330_p1 = pnand %p329_p0, %p323_p11 }
  0x21   :  { %333 = shalt.err (!%p330_p1)
}
  0x22   :  { %23 = dma.hbm_to_vmem [thread:$0]  %s511_s0, 128, %s21_s21, [#allocation3]  }
  0x23   :  { %s410_s16 = smov [#allocation7]   ;;  %s334_s20 = scalar_lea.hbm %s513_s2, 256 }
  0x24   :  { %s39_s17 = sshll.u32 %s410_s16, 4  ;;  %p335_p2 = scmp.ne.s32.totalorder %s513_s2, %s334_s20  ;;  %s40_s17 = int_to_ptr.vmem [resolvable:$true] %s39_s17 }
  0x25   :  { %p338_p3 = scmp.lt.u32.totalorder %s334_s20, %s513_s2 }
  0x27   :  { %p340_p4 = pnand %p338_p3, %p335_p2 }
  0x29   :  { %343 = shalt.err (!%p340_p4)
}
  0x2a   :  { %s344_s26 = scalar_lea.vmem %s40_s17, 256  ;;  %p349_p6 = scmp.lt.s32.totalorder %s40_s17, %s40_s17 }
  0x2b   :  { %p345_p5 = scmp.ne.s32.totalorder %s40_s17, %s344_s26  ;;  %p350_p7 = scmp.lt.s32.totalorder %s344_s26, %s344_s26 }
  0x2d   :  { %p351_p8 = por %p350_p7, %p349_p6 }
  0x2f   :  { %p352_p9 = pnand %p351_p8, %p345_p5 }
  0x31   :  { %355 = shalt.err (!%p352_p9)
}
  0x32   :  { %s411_s0 = smov 128   ;;  %s412_s21 = smov 8  }
  0x33   :  { %45 = dma.hbm_to_vmem [thread:$0]  %s513_s2, 256, %s40_s17, [#allocation6], %s411_s0, %s411_s0, %s412_s21  }
  0x34   :  { %s413_s29 = smov [#allocation8]   ;;  %s356_s8 = scalar_lea.hbm %s514_s3, 256 }
  0x35   :  { %s51_s30 = sshll.u32 %s413_s29, 4  ;;  %p357_p10 = scmp.ne.s32.totalorder %s514_s3, %s356_s8  ;;  %s52_s30 = int_to_ptr.vmem [resolvable:$true] %s51_s30 }
  0x36   :  { %p360_p11 = scmp.lt.u32.totalorder %s356_s8, %s514_s3 }
  0x38   :  { %p362_p12 = pnand %p360_p11, %p357_p10 }
  0x3a   :  { %365 = shalt.err (!%p362_p12)
}
  0x3b   :  { %s366_s13 = scalar_lea.vmem %s52_s30, 256  ;;  %p371_p0 = scmp.lt.s32.totalorder %s52_s30, %s52_s30 }
  0x3c   :  { %p367_p13 = scmp.ne.s32.totalorder %s52_s30, %s366_s13  ;;  %p372_p1 = scmp.lt.s32.totalorder %s366_s13, %s366_s13 }
  0x3e   :  { %p373_p2 = por %p372_p1, %p371_p0 }
  0x40   :  { %p374_p3 = pnand %p373_p2, %p367_p13 }
  0x42   :  { %377 = shalt.err (!%p374_p3)
}
  0x43   :  { %57 = dma.hbm_to_vmem [thread:$0]  %s514_s3, 256, %s52_s30, [#allocation9], %s411_s0, %s411_s0, %s412_s21  }
  0x44   :  { %400 = dma.done.wait [#allocation3], 128  }
  0x45   :  { %401 = vsyncadd [#allocation3], 4294967168 }
  0x46   :  { %402 = dma.done.wait [#allocation6], 384  }
  0x47   :  { %403 = vsyncadd [#allocation6], 4294966912 }
  0x48   :  { %404 = dma.done.wait [#allocation9], 256  }
  0x49   :  { %405 = vsyncadd [#allocation9], 4294967040  ;;  %v414_v0 = vmov 0.0|0.0   ;;  %vm415_vm0 = vmmov 0   ;;  %v416_v1 = vmov 0.0   ;;  %v76_v2 = vld [vmem:[#allocation8] sm:$0xff] }
  0x4a   :  { %274 = vmatprep.subr.bf16.mxu0 %v414_v0  ;;  %277 = vmatprep.subr.bf16.mxu1 %v414_v0  ;;  %v77_v3 = vld [vmem:[#allocation8 + $0x8] sm:$0xff]  ;;  %v73_v4 = vld [vmem:[#allocation7] sm:$0xff]  ;;  %v74_v6 = vld [vmem:[#allocation7 + $0x8] sm:$0xff]  ;;  %vm78_vm1 = vcmask 130048   ;;  %s417_s15 = smov [#allocation10]  }
  0x4b   :  { %264 = vmatprep.mubr.msk.f32.mxu0 %vm415_vm0, %v416_v1  ;;  %271 = vmatprep.mubr.msk.f32.mxu1 %vm415_vm0, %v416_v1  ;;  %v275_v5 = vpack.c.bf16 %v77_v3, %v76_v2  ;;  %v278_v7 = vpack.c.bf16 %v74_v6, %v73_v4  ;;  %v75_v8 = vld [vmem:[#allocation5] sm:$0xff]  ;;  %v72_v9 = vld [vmem:[#allocation2] sm:$0xff]  ;;  %s240_s16 = sshll.u32 %s417_s15, 4  ;;  %s241_s16 = int_to_ptr.vmem [resolvable:$true] %s240_s16 }
  0x4c   :  { %v253_v12 = vld [vmem:[%s515_s4] ss:$0 sm:$0xff]  ;;  %s378_s17 = scalar_lea.vmem %s241_s16, 128  ;;  %p383_p5 = scmp.lt.s32.totalorder %s241_s16, %s241_s16 }
  0x4d   :  { %276 = vmatpush3.bf16.msra.mxu0 %v275_v5  ;;  %279 = vmatpush3.bf16.msra.mxu1 %v278_v7  ;;  %p379_p4 = scmp.ne.s32.totalorder %s241_s16, %s378_s17  ;;  %p384_p6 = scmp.lt.s32.totalorder %s378_s17, %s378_s17 }
  0x4f   :  { %p385_p7 = por %p384_p6, %p383_p5 }
  0x50   :  { %265 = vmatmul.mubr.msk.f32.vlgmr.msra.gmra.mrb[0].mxu0 %vm78_vm1, %v75_v8  ;;  %272 = vmatmul.mubr.msk.f32.vlgmr.msra.gmra.mrb[0].mxu1 %vm78_vm1, %v72_v9 }
  0x51   :  { %p386_p8 = pnand %p385_p7, %p379_p4 }
 0x123   :  { %v148_v10 = vpop.f32.mrb[0].mxu0  ;;  %v221_v11 = vpop.f32.mrb[0].mxu1 }
 0x124   :  { %v266_v13 = vpop.f32.mrb[1].mxu0  ;;  %v222_v14 = vadd.f32 %v221_v11, %v148_v10  ;;  %v273_v15 = vpop.f32.mrb[1].mxu1 }
 0x126   :  { %v232_v16 = vadd.f32 %v253_v12, %v222_v14 }
 0x128   :  { %233 = vst [vmem:[#allocation10] sm:$0xff] %v232_v16 }
 0x129   :  { %389 = shalt.err (!%p386_p8)
}
 0x12a   :  { %s390_s20 = scalar_lea.hbm %s516_s5, 128 }
 0x12b   :  { %p391_p9 = scmp.ne.s32.totalorder %s516_s5, %s390_s20  ;;  %p394_p10 = scmp.lt.u32.totalorder %s390_s20, %s516_s5 }
 0x12d   :  { %p396_p11 = pnand %p394_p10, %p391_p9 }
 0x12f   :  { %399 = shalt.err (!%p396_p11)
}
 0x130   :  { %243 = dma.vmem_to_hbm [thread:$0]  %s241_s16, 128, %s516_s5, [#allocation4]  }
 0x131   :  { %406 = dma.done.wait [#allocation4], 128  }
 0x132   :  { %407 = vsyncadd [#allocation4], 4294967168 }
 0x133   :  { %247 = vsyncpa [#allocation3], 1 }
 0x134   :  { %248 = vsyncpa [#allocation6], 1 }
 0x135   :  { %249 = vsyncpa [#allocation9], 1 }
 0x136   :  { %250 = vsyncpa [#allocation4], 1 }

</bundles_post_ra>
